<compile_context>
chip_gen: v6e
topology: v6e:2x2x1
jax: 0.10.0
libtpu: 0.0.40
codegen_flags: <defaults>
</compile_context>

<pallas_src>
import functools

import jax
import jax.numpy as jnp
from jax.experimental import pallas as pl
from jax.experimental.pallas import tpu as pltpu

BN_EPS = 1e-5
VMEM_LIMIT_BYTES = 48 * 1024 * 1024  # safe on v5e/v6e (128 MiB) and v7x (64 MiB)


def _pick_row_tile(n_rows):
    """Largest convenient row tile that divides N (multiples of 8 for sublanes)."""
    for tm in (512, 256, 128, 64, 32, 16, 8):
        if n_rows % tm == 0:
            return tm
    return n_rows  # full-array block is always a legal BlockSpec


# --------------------------- pass 1: BN statistics ---------------------------

def _stats_kernel(x_ref, w1_ref, gamma_ref, beta_ref,      # inputs
                  scale_ref, shift_ref,                     # outputs
                  sum_ref, sumsq_ref,                       # VMEM scratch
                  *, n_rows):
    step = pl.program_id(0)

    @pl.when(step == 0)
    def _():
        sum_ref[...] = jnp.zeros_like(sum_ref)
        sumsq_ref[...] = jnp.zeros_like(sumsq_ref)

    # Hidden Linear.  b1 is intentionally omitted: it is constant across rows and
    # cancels exactly in the BatchNorm (h - mean) subtraction.
    h = jnp.dot(x_ref[...], w1_ref[...], preferred_element_type=jnp.float32)

    # Single-pass statistics: per-feature sum and sum of squares.
    sum_ref[...] += jnp.sum(h, axis=0, keepdims=True)
    sumsq_ref[...] += jnp.sum(h * h, axis=0, keepdims=True)

    @pl.when(step == pl.num_programs(0) - 1)
    def _():
        inv_n = 1.0 / float(n_rows)
        mean = sum_ref[...] * inv_n
        var = sumsq_ref[...] * inv_n - mean * mean          # biased (training-mode)
        rstd = jax.lax.rsqrt(var + BN_EPS)
        scale = gamma_ref[...] * rstd
        scale_ref[...] = scale
        shift_ref[...] = beta_ref[...] - mean * scale


# ----------------------- pass 2: normalize + fused heads ---------------------

def _apply_kernel(x_ref, w1_ref, scale_ref, shift_ref, wh_ref, bh_ref, out_ref):
    # Recompute the hidden activation for this row tile (cheaper than spilling
    # the f32 hidden tensor to HBM and reading it back).
    h = jnp.dot(x_ref[...], w1_ref[...], preferred_element_type=jnp.float32)
    # Folded BatchNorm (training stats) + ReLU, kept in f32 on the VPU.
    hn = jnp.maximum(h * scale_ref[...] + shift_ref[...], 0.0)
    # All task heads fused into one lane-dense matmul: (TM, in) @ (in, T*out).
    y = jnp.dot(hn.astype(wh_ref.dtype), wh_ref[...],
                preferred_element_type=jnp.float32) + bh_ref[...]
    out_ref[...] = y.astype(out_ref.dtype)


# ---------------------------------- wrapper ----------------------------------

def moby_mlp_multihead(x, params, *, use_bf16=True):
    """x: (B, S, in_dim) -> list of (B, S, out_dim), one per task head."""
    w1, b1, gamma, beta, wh, bh = params  # b1 kept in signature; cancels in BN
    del b1
    B, S, in_dim = x.shape
    N = B * S
    inner_dim = w1.shape[0]
    num_tasks, out_dim, head_in = wh.shape
    assert head_in == in_dim and inner_dim == in_dim, (
        "MoBYMLP_multihead with num_layers>1 requires inner_dim == in_dim")

    compute_dtype = jnp.bfloat16 if use_bf16 else x.dtype
    itemsize = jnp.dtype(compute_dtype).itemsize
    fused_out = num_tasks * out_dim

    # Glue: flatten rows, pre-transpose / fuse weights, make vectors 2-D.
    x_flat = x.reshape(N, in_dim).astype(compute_dtype)
    w1_t = w1.T.astype(compute_dtype)                                # (in, inner)
    gamma_r = gamma.reshape(1, inner_dim).astype(jnp.float32)
    beta_r = beta.reshape(1, inner_dim).astype(jnp.float32)
    # (T, out, in) -> (in, T, out) -> (in, T*out): one lane-dense output slab.
    wh_cat = jnp.transpose(wh, (2, 0, 1)).reshape(in_dim, fused_out)
    wh_cat = wh_cat.astype(compute_dtype)
    bh_cat = bh.reshape(1, fused_out).astype(jnp.float32)

    TM = _pick_row_tile(N)
    n_tiles = N // TM

    # ----- pass 1: folded BN scale/shift from full-batch statistics -----
    scale, shift = pl.pallas_call(
        functools.partial(_stats_kernel, n_rows=N),
        out_shape=(jax.ShapeDtypeStruct((1, inner_dim), jnp.float32),
                   jax.ShapeDtypeStruct((1, inner_dim), jnp.float32)),
        grid=(n_tiles,),
        in_specs=[
            pl.BlockSpec((TM, in_dim), lambda i: (i, 0)),
            pl.BlockSpec((in_dim, inner_dim), lambda i: (0, 0)),
            pl.BlockSpec((1, inner_dim), lambda i: (0, 0)),
            pl.BlockSpec((1, inner_dim), lambda i: (0, 0)),
        ],
        out_specs=(pl.BlockSpec((1, inner_dim), lambda i: (0, 0)),
                   pl.BlockSpec((1, inner_dim), lambda i: (0, 0))),
        scratch_shapes=[pltpu.VMEM((1, inner_dim), jnp.float32),
                        pltpu.VMEM((1, inner_dim), jnp.float32)],
        compiler_params=pltpu.CompilerParams(
            dimension_semantics=("arbitrary",),
            vmem_limit_bytes=VMEM_LIMIT_BYTES),
        cost_estimate=pl.CostEstimate(
            flops=2 * N * in_dim * inner_dim,
            transcendentals=inner_dim,
            bytes_accessed=N * in_dim * itemsize
                           + in_dim * inner_dim * itemsize
                           + 4 * inner_dim * 4),
    )(x_flat, w1_t, gamma_r, beta_r)

    # ----- pass 2: normalize + ReLU + fused task heads -----
    out = pl.pallas_call(
        _apply_kernel,
        out_shape=jax.ShapeDtypeStruct((N, fused_out), x.dtype),
        grid=(n_tiles,),
        in_specs=[
            pl.BlockSpec((TM, in_dim), lambda i: (i, 0)),
            pl.BlockSpec((in_dim, inner_dim), lambda i: (0, 0)),
            pl.BlockSpec((1, inner_dim), lambda i: (0, 0)),
            pl.BlockSpec((1, inner_dim), lambda i: (0, 0)),
            pl.BlockSpec((inner_dim, fused_out), lambda i: (0, 0)),
            pl.BlockSpec((1, fused_out), lambda i: (0, 0)),
        ],
        out_specs=pl.BlockSpec((TM, fused_out), lambda i: (i, 0)),
        compiler_params=pltpu.CompilerParams(
            dimension_semantics=("parallel",),
            vmem_limit_bytes=VMEM_LIMIT_BYTES),
        cost_estimate=pl.CostEstimate(
            flops=2 * N * in_dim * inner_dim + 2 * N * inner_dim * fused_out,
            transcendentals=0,
            bytes_accessed=N * in_dim * itemsize
                           + in_dim * inner_dim * itemsize
                           + inner_dim * fused_out * itemsize
                           + (2 * inner_dim + fused_out) * 4
                           + N * fused_out * jnp.dtype(x.dtype).itemsize),
    )(x_flat, w1_t, scale, shift, wh_cat, bh_cat)

    # Split the fused lane-dense slab back into per-task outputs.
    return [out[:, t * out_dim:(t + 1) * out_dim].reshape(B, S, out_dim)
            for t in range(num_tasks)]


# ------------------------------ params / reference ---------------------------

def init_params(key, in_dim, inner_dim, out_dim, num_tasks):
    k1, k2, k3, k4 = jax.random.split(key, 4)
    w1 = jax.random.normal(k1, (inner_dim, in_dim), jnp.float32) * 0.05
    b1 = jax.random.normal(k2, (inner_dim,), jnp.float32) * 0.05
    gamma = jnp.ones((inner_dim,), jnp.float32)     # BatchNorm1d weight
    beta = jnp.zeros((inner_dim,), jnp.float32)     # BatchNorm1d bias
    wh = jax.random.normal(k3, (num_tasks, out_dim, in_dim), jnp.float32) * 0.05
    bh = jax.random.normal(k4, (num_tasks, out_dim), jnp.float32) * 0.05
    return w1, b1, gamma, beta, wh, bh


def ref_forward(x, params):
    """Pure-JAX f32 reference of the PyTorch forward (training-mode BN)."""
    w1, b1, gamma, beta, wh, bh = params
    B, S, F = x.shape
    xf = x.reshape(-1, F)
    h = xf @ w1.T + b1
    mean = h.mean(0, keepdims=True)
    var = ((h - mean) ** 2).mean(0, keepdims=True)
    h = (h - mean) / jnp.sqrt(var + BN_EPS) * gamma + beta
    h = jnp.maximum(h, 0.0)
    return [(h @ wh[t].T + bh[t]).reshape(B, S, -1) for t in range(wh.shape[0])]


if __name__ == "__main__":
    # small shapes: batch=2, seq=8, in_dim=inner_dim=32, out_dim=16, num_tasks=2
    B, S = 2, 8
    in_dim, inner_dim, out_dim, num_tasks = 32, 32, 16, 2

    key = jax.random.PRNGKey(0)
    kx, kp = jax.random.split(key)
    x = jax.random.normal(kx, (B, S, in_dim), jnp.float32)
    params = init_params(kp, in_dim, inner_dim, out_dim, num_tasks)

    refs = ref_forward(x, params)

    # Strict correctness check: f32 compute path vs the f32 reference.
    outs_f32 = moby_mlp_multihead(x, params, use_bf16=False)
    outs_f32 = [jax.block_until_ready(o) for o in outs_f32]
    for o, r in zip(outs_f32, refs):
        assert o.shape == (B, S, out_dim)
        assert jnp.allclose(o, r, atol=1e-4, rtol=1e-4), "f32 mismatch vs reference"

    # Performance path: bf16 inputs / f32 accumulation (looser tolerance).
    outs_bf16 = moby_mlp_multihead(x, params, use_bf16=True)
    outs_bf16 = [jax.block_until_ready(o) for o in outs_bf16]
    for o, r in zip(outs_bf16, refs):
        assert o.shape == (B, S, out_dim)
        assert jnp.allclose(o, r, atol=5e-2, rtol=5e-2), "bf16 mismatch vs reference"

    print("KERNEL_OK")
</pallas_src>

<mosaic_0001>
module attributes {stable_mosaic.version = 11 : i64} {
  func.func @_stats_kernel(%arg0: i32, %arg1: memref<16x32xf32, #tpu.memory_space<vmem>>, %arg2: memref<32x32xf32, #tpu.memory_space<vmem>>, %arg3: memref<1x32xf32, #tpu.memory_space<vmem>>, %arg4: memref<1x32xf32, #tpu.memory_space<vmem>>, %arg5: memref<1x32xf32, #tpu.memory_space<vmem>>, %arg6: memref<1x32xf32, #tpu.memory_space<vmem>>, %arg7: memref<1x32xf32, #tpu.memory_space<vmem>>, %arg8: memref<1x32xf32, #tpu.memory_space<vmem>>) attributes {dimension_semantics = [#tpu.dimension_semantics<arbitrary>], iteration_bounds = array<i64: 1>, scalar_prefetch = 0 : i64, scratch_operands = 2 : i64, tpu.core_type = #tpu.core_type<tc>, window_params = [{transform_indices = @transform_0, window_bounds = array<i64: 16, 32>}, {pipeline_mode = #tpu.pipeline_mode<synchronous>, transform_indices = @transform_1, window_bounds = array<i64: 32, 32>}, {pipeline_mode = #tpu.pipeline_mode<synchronous>, transform_indices = @transform_2, window_bounds = array<i64: 1, 32>}, {pipeline_mode = #tpu.pipeline_mode<synchronous>, transform_indices = @transform_3, window_bounds = array<i64: 1, 32>}, {pipeline_mode = #tpu.pipeline_mode<synchronous>, transform_indices = @transform_4, window_bounds = array<i64: 1, 32>}, {pipeline_mode = #tpu.pipeline_mode<synchronous>, transform_indices = @transform_5, window_bounds = array<i64: 1, 32>}]} {
    %c0_i32 = arith.constant 0 : i32
    %0 = arith.cmpi eq, %arg0, %c0_i32 : i32
    %1 = arith.extui %0 : i1 to i32
    %c0_i32_0 = arith.constant 0 : i32
    %2 = arith.cmpi ne, %1, %c0_i32_0 : i32
    scf.if %2 {
      %cst_16 = arith.constant 0.000000e+00 : f32
      %20 = vector.broadcast %cst_16 : f32 to vector<1x32xf32>
      %c0_17 = arith.constant 0 : index
      %c0_18 = arith.constant 0 : index
      %21 = vector.load %arg7[%c0_17, %c0_18] : memref<1x32xf32, #tpu.memory_space<vmem>>, vector<1x32xf32>
      tpu.vector_store %arg7[%c0_17, %c0_18], %20 {strides = array<i32>} : memref<1x32xf32, #tpu.memory_space<vmem>>, vector<1x32xf32>,
      %cst_19 = arith.constant 0.000000e+00 : f32
      %22 = vector.broadcast %cst_19 : f32 to vector<1x32xf32>
      %c0_20 = arith.constant 0 : index
      %c0_21 = arith.constant 0 : index
      %23 = vector.load %arg8[%c0_20, %c0_21] : memref<1x32xf32, #tpu.memory_space<vmem>>, vector<1x32xf32>
      tpu.vector_store %arg8[%c0_20, %c0_21], %22 {strides = array<i32>} : memref<1x32xf32, #tpu.memory_space<vmem>>, vector<1x32xf32>,
    } else {
    }
    %c0 = arith.constant 0 : index
    %c0_1 = arith.constant 0 : index
    %3 = vector.load %arg1[%c0, %c0_1] : memref<16x32xf32, #tpu.memory_space<vmem>>, vector<16x32xf32>
    %c0_2 = arith.constant 0 : index
    %c0_3 = arith.constant 0 : index
    %4 = vector.load %arg2[%c0_2, %c0_3] : memref<32x32xf32, #tpu.memory_space<vmem>>, vector<32x32xf32>
    %cst = arith.constant dense<0.000000e+00> : vector<16x32xf32>
    %5 = tpu.matmul %3, %4, %cst {dimension_numbers = #tpu.dot_dimension_numbers<[1], [0], [0], [1], [0, 0, 1, 1], [], []>} : vector<16x32xf32>, vector<32x32xf32>, vector<16x32xf32> -> vector<16x32xf32>
    %c0_4 = arith.constant 0 : index
    %c0_5 = arith.constant 0 : index
    %6 = vector.load %arg7[%c0_4, %c0_5] : memref<1x32xf32, #tpu.memory_space<vmem>>, vector<1x32xf32>
    %cst_6 = arith.constant dense<0.000000e+00> : vector<32xf32>
    %7 = vector.multi_reduction <add>, %5, %cst_6 [0] : vector<16x32xf32> to vector<32xf32>
    %8 = vector.shape_cast %7 : vector<32xf32> to vector<1x32xf32>
    %9 = arith.addf %6, %8 : vector<1x32xf32>
    %c0_7 = arith.constant 0 : index
    %c0_8 = arith.constant 0 : index
    %10 = vector.load %arg7[%c0_7, %c0_8] : memref<1x32xf32, #tpu.memory_space<vmem>>, vector<1x32xf32>
    tpu.vector_store %arg7[%c0_7, %c0_8], %9 {strides = array<i32>} : memref<1x32xf32, #tpu.memory_space<vmem>>, vector<1x32xf32>,
    %c0_9 = arith.constant 0 : index
    %c0_10 = arith.constant 0 : index
    %11 = vector.load %arg8[%c0_9, %c0_10] : memref<1x32xf32, #tpu.memory_space<vmem>>, vector<1x32xf32>
    %12 = arith.mulf %5, %5 : vector<16x32xf32>
    %cst_11 = arith.constant dense<0.000000e+00> : vector<32xf32>
    %13 = vector.multi_reduction <add>, %12, %cst_11 [0] : vector<16x32xf32> to vector<32xf32>
    %14 = vector.shape_cast %13 : vector<32xf32> to vector<1x32xf32>
    %15 = arith.addf %11, %14 : vector<1x32xf32>
    %c0_12 = arith.constant 0 : index
    %c0_13 = arith.constant 0 : index
    %16 = vector.load %arg8[%c0_12, %c0_13] : memref<1x32xf32, #tpu.memory_space<vmem>>, vector<1x32xf32>
    tpu.vector_store %arg8[%c0_12, %c0_13], %15 {strides = array<i32>} : memref<1x32xf32, #tpu.memory_space<vmem>>, vector<1x32xf32>,
    %c0_i32_14 = arith.constant 0 : i32
    %17 = arith.cmpi eq, %arg0, %c0_i32_14 : i32
    %18 = arith.extui %17 : i1 to i32
    %c0_i32_15 = arith.constant 0 : i32
    %19 = arith.cmpi ne, %18, %c0_i32_15 : i32
    scf.if %19 {
      %c0_16 = arith.constant 0 : index
      %c0_17 = arith.constant 0 : index
      %20 = vector.load %arg7[%c0_16, %c0_17] : memref<1x32xf32, #tpu.memory_space<vmem>>, vector<1x32xf32>
      %cst_18 = arith.constant 6.250000e-02 : f32
      %21 = vector.broadcast %cst_18 : f32 to vector<1x32xf32>
      %22 = arith.mulf %20, %21 : vector<1x32xf32>
      %c0_19 = arith.constant 0 : index
      %c0_20 = arith.constant 0 : index
      %23 = vector.load %arg8[%c0_19, %c0_20] : memref<1x32xf32, #tpu.memory_space<vmem>>, vector<1x32xf32>
      %cst_21 = arith.constant 6.250000e-02 : f32
      %24 = vector.broadcast %cst_21 : f32 to vector<1x32xf32>
      %25 = arith.mulf %23, %24 : vector<1x32xf32>
      %26 = arith.mulf %22, %22 : vector<1x32xf32>
      %27 = arith.subf %25, %26 : vector<1x32xf32>
      %cst_22 = arith.constant 9.99999974E-6 : f32
      %28 = vector.broadcast %cst_22 : f32 to vector<1x32xf32>
      %29 = arith.addf %27, %28 : vector<1x32xf32>
      %30 = math.rsqrt %29 : vector<1x32xf32>
      %c0_23 = arith.constant 0 : index
      %c0_24 = arith.constant 0 : index
      %31 = vector.load %arg3[%c0_23, %c0_24] : memref<1x32xf32, #tpu.memory_space<vmem>>, vector<1x32xf32>
      %32 = arith.mulf %31, %30 : vector<1x32xf32>
      %c0_25 = arith.constant 0 : index
      %c0_26 = arith.constant 0 : index
      %33 = vector.load %arg5[%c0_25, %c0_26] : memref<1x32xf32, #tpu.memory_space<vmem>>, vector<1x32xf32>
      tpu.vector_store %arg5[%c0_25, %c0_26], %32 {strides = array<i32>} : memref<1x32xf32, #tpu.memory_space<vmem>>, vector<1x32xf32>,
      %c0_27 = arith.constant 0 : index
      %c0_28 = arith.constant 0 : index
      %34 = vector.load %arg4[%c0_27, %c0_28] : memref<1x32xf32, #tpu.memory_space<vmem>>, vector<1x32xf32>
      %35 = arith.mulf %22, %32 : vector<1x32xf32>
      %36 = arith.subf %34, %35 : vector<1x32xf32>
      %c0_29 = arith.constant 0 : index
      %c0_30 = arith.constant 0 : index
      %37 = vector.load %arg6[%c0_29, %c0_30] : memref<1x32xf32, #tpu.memory_space<vmem>>, vector<1x32xf32>
      tpu.vector_store %arg6[%c0_29, %c0_30], %36 {strides = array<i32>} : memref<1x32xf32, #tpu.memory_space<vmem>>, vector<1x32xf32>,
    } else {
    }
    return
  }
  func.func @transform_0(%arg0: i32) -> (i32, i32) {
    %c0_i32 = arith.constant 0 : i32
    %c0_i32_0 = arith.constant 0 : i32
    return %arg0, %c0_i32 : i32, i32
  }
  func.func @transform_1(%arg0: i32) -> (i32, i32) {
    %c0_i32 = arith.constant 0 : i32
    %c0_i32_0 = arith.constant 0 : i32
    %c0_i32_1 = arith.constant 0 : i32
    return %c0_i32, %c0_i32_0 : i32, i32
  }
  func.func @transform_2(%arg0: i32) -> (i32, i32) {
    %c0_i32 = arith.constant 0 : i32
    %c0_i32_0 = arith.constant 0 : i32
    %c0_i32_1 = arith.constant 0 : i32
    return %c0_i32, %c0_i32_0 : i32, i32
  }
  func.func @transform_3(%arg0: i32) -> (i32, i32) {
    %c0_i32 = arith.constant 0 : i32
    %c0_i32_0 = arith.constant 0 : i32
    %c0_i32_1 = arith.constant 0 : i32
    return %c0_i32, %c0_i32_0 : i32, i32
  }
  func.func @transform_4(%arg0: i32) -> (i32, i32) {
    %c0_i32 = arith.constant 0 : i32
    %c0_i32_0 = arith.constant 0 : i32
    %c0_i32_1 = arith.constant 0 : i32
    return %c0_i32, %c0_i32_0 : i32, i32
  }
  func.func @transform_5(%arg0: i32) -> (i32, i32) {
    %c0_i32 = arith.constant 0 : i32
    %c0_i32_0 = arith.constant 0 : i32
    %c0_i32_1 = arith.constant 0 : i32
    return %c0_i32, %c0_i32_0 : i32, i32
  }
}

</mosaic_0001>

<bundles_post_ra>
// kernel: tpu_custom_call.1
= control target key start
LH: loop header
LB: loop body
LE: loop exit
PB: predicated region body
PF: predicated region fallthrough
CT: control target
= control target key end

     0   :  { %11 = vsyncpa [#allocation5], 0  ;;  %s402_s0 = inlined_call_operand.hbm [shape: f32[16,32], index: 0, kind: input, shape index: {}]   ;;  %s403_s1 = inlined_call_operand.hbm [shape: f32[32,32], index: 1, kind: input, shape index: {}]   ;;  %s404_s2 = inlined_call_operand.vmem [shape: f32[1,32], index: 2, kind: input, shape index: {}]   ;;  %s405_s3 = inlined_call_operand.vmem [shape: f32[1,32], index: 3, kind: input, shape index: {}]   ;;  %s406_s4 = inlined_call_operand.hbm [shape: f32[1,32], index: 4, kind: output, shape index: {0}]   ;;  %s407_s5 = inlined_call_operand.hbm [shape: f32[1,32], index: 5, kind: output, shape index: {1}]  }
   0x1   :  { %12 = vsyncpa [#allocation8], 0 }
   0x2   :  { %13 = vsyncpa [#allocation6], 0 }
   0x3   :  { %14 = vsyncpa [#allocation11], 0  ;;  %s335_s18 = smov [#allocation4]  }
   0x4   :  { %s20_s19 = sshll.u32 %s335_s18, 4  ;;  %s21_s19 = int_to_ptr.vmem [resolvable:$true] %s20_s19 }
   0x5   :  { %s255_s20 = scalar_lea.vmem %s21_s19, 256  ;;  %p260_p1 = scmp.lt.s32.totalorder %s21_s19, %s21_s19 }
   0x6   :  { %p256_p0 = scmp.ne.s32.totalorder %s21_s19, %s255_s20  ;;  %p261_p2 = scmp.lt.s32.totalorder %s255_s20, %s255_s20 }
   0x8   :  { %p262_p3 = por %p261_p2, %p260_p1 }
   0xa   :  { %p263_p4 = pnand %p262_p3, %p256_p0 }
   0xc   :  { %266 = shalt.err (!%p263_p4)
}
   0xd   :  { %s336_s21 = smov 128   ;;  %s337_s22 = smov 8  }
   0xe   :  { %26 = dma.hbm_to_vmem [thread:$0]  %s402_s0, 256, %s21_s19, [#allocation5], %s336_s21, %s336_s21, %s337_s22  }
   0xf   :  { %s338_s25 = smov [#allocation7]  }
  0x10   :  { %s32_s26 = sshll.u32 %s338_s25, 4  ;;  %s33_s26 = int_to_ptr.vmem [resolvable:$true] %s32_s26 }
  0x11   :  { %s275_s27 = scalar_lea.vmem %s33_s26, 512  ;;  %p280_p6 = scmp.lt.s32.totalorder %s33_s26, %s33_s26 }
  0x12   :  { %p276_p5 = scmp.ne.s32.totalorder %s33_s26, %s275_s27  ;;  %p281_p7 = scmp.lt.s32.totalorder %s275_s27, %s275_s27 }
  0x14   :  { %p282_p8 = por %p281_p7, %p280_p6 }
  0x16   :  { %p283_p9 = pnand %p282_p8, %p276_p5 }
  0x18   :  { %286 = shalt.err (!%p283_p9)
}
  0x19   :  { %38 = dma.hbm_to_vmem [thread:$0]  %s403_s1, 512, %s33_s26, [#allocation8], %s336_s21, %s336_s21, %s337_s22  }
  0x1a   :  { %327 = dma.done.wait [#allocation5], 256  }
  0x1b   :  { %328 = vsyncadd [#allocation5], 4294967040 }
  0x1c   :  { %329 = dma.done.wait [#allocation8], 512  }
  0x1d   :  { %330 = vsyncadd [#allocation8], 4294966784  ;;  %vm62_vm0 = vcmask 261120   ;;  %v61_v0 = vld [vmem:[#allocation7 + $0x18] sm:$0xff]  ;;  %v60_v1 = vld [vmem:[#allocation7 + $0x10] sm:$0xff]  ;;  %vm53_vm1 = vcmask 253952  }
  0x1e   :  { %227 = vmatprep.subr.mxu0 %v61_v0  ;;  %v56_v2 = vld [vmem:[#allocation4] sm:$0xff]  ;;  %v59_v3 = vld [vmem:[#allocation7 + $0x8] sm:$0xff]  ;;  %v58_v4 = vld [vmem:[#allocation7] sm:$0xff]  ;;  %v339_v6 = vmov 0.0   ;;  %s340_s30 = smov [#allocation9]   ;;  %s341_s9 = smov [#allocation10]  }
  0x1f   :  { %228 = vmatpush3.msra.mxu0 %v61_v0  ;;  %235 = vmatprep.mubr.msk.f32.mxu0 %vm62_vm0, %v56_v2  ;;  %v57_v5 = vld [vmem:[#allocation4 + $0x8] sm:$0xff]  ;;  %54 = vst.msk [vmem:[#allocation2] sm:$0x1] %vm53_vm1, %v339_v6  ;;  %55 = vst.msk [vmem:[#allocation3] sm:$0x1] %vm53_vm1, %v339_v6  ;;  %s195_s6 = sshll.u32 %s340_s30, 4  ;;  %s196_s6 = int_to_ptr.vmem [resolvable:$true] %s195_s6 }
  0x20   :  { %229 = vmatprep.subr.mxu0 %v60_v1  ;;  %v182_v40 = vld [vmem:[%s404_s2] sm:$0x1]  ;;  %s205_s10 = sshll.u32 %s341_s9, 4  ;;  %s287_s11 = scalar_lea.vmem %s196_s6, 16  ;;  %s206_s10 = int_to_ptr.vmem [resolvable:$true] %s205_s10 }
  0x21   :  { %230 = vmatpush3.msra.mxu0 %v60_v1  ;;  %v185_v43 = vld [vmem:[%s405_s3] sm:$0x1]  ;;  %p288_p10 = scmp.ne.s32.totalorder %s196_s6, %s287_s11  ;;  %s291_s12 = scalar_lea.vmem %s196_s6, 32 }
  0x22   :  { %231 = vmatprep.subr.mxu0 %v59_v3  ;;  %p292_p11 = scmp.lt.s32.totalorder %s196_s6, %s196_s6  ;;  %p293_p12 = scmp.lt.s32.totalorder %s291_s12, %s287_s11 }
  0x23   :  { %232 = vmatpush3.msra.mxu0 %v59_v3 }
  0x24   :  { %233 = vmatprep.subr.mxu0 %v58_v4  ;;  %p294_p13 = por %p293_p12, %p292_p11 }
  0x25   :  { %234 = vmatpush3.msra.mxu0 %v58_v4 }
  0x26   :  { %236 = vmatmul.mubr.msk.f32.vlgmr.msra.gmra.mxu0 %vm62_vm0, %v57_v5  ;;  %v144_v26 = vld [vmem:[#allocation2] sm:$0x1]  ;;  %v157_v29 = vld [vmem:[#allocation3] sm:$0x1]  ;;  %p295_p0 = pnand %p294_p13, %p288_p10 }
  0xe6   :  { %v237_v7 = vpop.f32.mrf.mxu0 }
  0xe7   :  { %v159_v8 = vmul.f32 %v237_v7, %v237_v7  ;;  %v146_v10 = vsel %vm62_vm0, %v237_v7, 0.0 }
  0xe8   :  { %v135_v9 = vpop.f32.mrf.mxu0 }
  0xe9   :  { %v145_v11 = vsel %vm62_vm0, %v135_v9, 0.0  ;;  %v158_v12 = vmul.f32 %v135_v9, %v135_v9  ;;  %v161_v14 = vsel %vm62_vm0, %v159_v8, 0.0 }
  0xea   :  { %v147_v13 = vadd.f32 %v146_v10, %v145_v11 }
  0xeb   :  { %v160_v15 = vsel %vm62_vm0, %v158_v12, 0.0 }
  0xec   :  { %v148_v16 = vrot.slane %v147_v13, 4  ;;  %v162_v17 = vadd.f32 %v161_v14, %v160_v15 }
  0xee   :  { %v149_v18 = vadd.f32 %v148_v16, %v147_v13  ;;  %v163_v19 = vrot.slane %v162_v17, 4 }
  0xf0   :  { %v150_v20 = vrot.slane %v149_v18, 2  ;;  %v164_v21 = vadd.f32 %v163_v19, %v162_v17 }
  0xf2   :  { %v151_v22 = vadd.f32 %v150_v20, %v149_v18  ;;  %v165_v23 = vrot.slane %v164_v21, 2 }
  0xf4   :  { %v152_v24 = vrot.slane %v151_v22, 1  ;;  %v166_v25 = vadd.f32 %v165_v23, %v164_v21 }
  0xf6   :  { %v153_v27 = vadd.f32 %v152_v24, %v151_v22  ;;  %v167_v28 = vrot.slane %v166_v25, 1 }
  0xf8   :  { %v154_v30 = vadd.f32 %v153_v27, %v144_v26  ;;  %v168_v31 = vadd.f32 %v167_v28, %v166_v25 }
  0xfa   :  { %156 = vst.msk [vmem:[#allocation2] sm:$0x1] %vm53_vm1, %v154_v30  ;;  %v169_v32 = vadd.f32 %v168_v31, %v157_v29 }
  0xfc   :  { %170 = vst.msk [vmem:[#allocation3] sm:$0x1] %vm53_vm1, %v169_v32 }
 0x101   :  { %v174_v33 = vld [vmem:[#allocation2] sm:$0x1] }
 0x102   :  { %v175_v34 = vmul.f32 0.0625, %v174_v33 }
 0x103   :  { %v176_v35 = vld [vmem:[#allocation3] sm:$0x1] }
 0x104   :  { %v177_v36 = vmul.f32 0.0625, %v176_v35  ;;  %v178_v37 = vmul.f32 %v175_v34, %v175_v34 }
 0x106   :  { %v179_v38 = vsub.f32 %v177_v36, %v178_v37 }
 0x108   :  { %v180_v39 = vadd.f32 1e-05, %v179_v38 }
 0x10a   :  { %245 = vrsqrt.f32 %v180_v39 }
 0x117   :  { %v246_v41 = vpop.eup %245 }
 0x118   :  { %v183_v42 = vmul.f32 %v246_v41, %v182_v40 }
 0x11a   :  { %184 = vst.msk [vmem:[#allocation9] sm:$0x1] %vm53_vm1, %v183_v42  ;;  %v186_v44 = vmul.f32 %v183_v42, %v175_v34 }
 0x11b   :  { %298 = shalt.err (!%p295_p0)
}
 0x11c   :  { %198 = dma.vmem_to_hbm [thread:$0]  %s196_s6, 16, %s406_s4, [#allocation6]   ;;  %v187_v45 = vsub.f32 %v185_v43, %v186_v44 }
 0x11d   :  { %s307_s3 = scalar_lea.vmem %s206_s10, 16  ;;  %s311_s14 = scalar_lea.vmem %s206_s10, 32 }
 0x11e   :  { %188 = vst.msk [vmem:[#allocation10] sm:$0x1] %vm53_vm1, %v187_v45  ;;  %p308_p1 = scmp.ne.s32.totalorder %s206_s10, %s307_s3  ;;  %p312_p2 = scmp.lt.s32.totalorder %s206_s10, %s206_s10 }
 0x11f   :  { %p313_p3 = scmp.lt.s32.totalorder %s311_s14, %s307_s3 }
 0x121   :  { %p314_p4 = por %p313_p3, %p312_p2 }
 0x123   :  { %p315_p5 = pnand %p314_p4, %p308_p1 }
 0x125   :  { %318 = shalt.err (!%p315_p5)
}
 0x126   :  { %208 = dma.vmem_to_hbm [thread:$0]  %s206_s10, 16, %s407_s5, [#allocation11]  }
 0x127   :  { %331 = dma.done.wait [#allocation6], 16  }
 0x128   :  { %332 = vsyncadd [#allocation6], 4294967280 }
 0x129   :  { %333 = dma.done.wait [#allocation11], 16  }
 0x12a   :  { %334 = vsyncadd [#allocation11], 4294967280 }
 0x12b   :  { %215 = vsyncpa [#allocation5], 1 }
 0x12c   :  { %216 = vsyncpa [#allocation8], 1 }
 0x12d   :  { %217 = vsyncpa [#allocation6], 1 }
 0x12e   :  { %218 = vsyncpa [#allocation11], 1 }

</bundles_post_ra>
